<compile_context>
chip_gen: v6e
topology: v6e:2x2x1
jax: 0.10.0
libtpu: 0.0.40
codegen_flags: <defaults>
</compile_context>

<pallas_src>
import jax
import jax.numpy as jnp
from jax.experimental import pallas as pl
from jax.experimental.pallas import tpu as pltpu

LANE = 128        # TPU lane width (last dim)
ROW_ALIGN = 16    # bf16 sublane pack (second-to-last dim)


def _cdiv(a, b):
    return -(-a // b)


def _round_up(n, m):
    return _cdiv(n, m) * m


def _sigmoid(t):
    # Exact: sigmoid(t) = (1 + tanh(t/2)) / 2.  Single EUP transcendental;
    # the extra mul/add land on the 4-slot VALU which has slack.
    return 0.5 * jnp.tanh(0.5 * t) + 0.5


def mlp_kernel(x_ref, w1_ref, b1_ref, w2_ref, b2_ref, w3_ref, b3_ref, out_ref):
    """Fused Linear->Sigmoid->Linear->Sigmoid->Linear for one batch tile."""
    # bf16 cast on the VPU, hidden under the x DMA (no wrapper-side pass).
    x = x_ref[...].astype(jnp.bfloat16)                               # (TB, in)

    # Layer 1: Linear + Sigmoid (f32 accumulation via preferred_element_type)
    h1 = jnp.dot(x, w1_ref[...], preferred_element_type=jnp.float32) + b1_ref[...]
    h1 = _sigmoid(h1)                                                 # (TB, h1p) f32

    # Layer 2: Linear + Sigmoid
    h2 = jnp.dot(h1.astype(jnp.bfloat16), w2_ref[...],
                 preferred_element_type=jnp.float32) + b2_ref[...]
    h2 = _sigmoid(h2)                                                 # (TB, h2p) f32

    # Output layer: Linear only (matches the nn.Sequential tail, logits out)
    out = jnp.dot(h2.astype(jnp.bfloat16), w3_ref[...],
                  preferred_element_type=jnp.float32) + b3_ref[...]
    out_ref[...] = out.astype(out_ref.dtype)                          # (TB, out_dim)


def prepare_params(params):
    """One-time weight pad + bf16 cast, hoisted out of the per-call path.

    Hidden dims are zero-padded to multiples of 128 (lane-dense
    intermediates).  The padding is exact: padded hidden units see zero
    weight columns (-> sigmoid(0)=0.5) but the matching zero ROWS of the next
    layer's weight kill their contribution.  out_dim and input_dim are left
    unpadded (memory-bound kernel; extra padding only adds HBM bytes).
    """
    input_dim = params["w1"].shape[0]
    h1 = params["w1"].shape[1]
    h2 = params["w2"].shape[1]
    out_dim = params["w3"].shape[1]
    h1p = _round_up(h1, LANE)
    h2p = _round_up(h2, LANE)

    def pad2(a, r, c):
        return jnp.pad(a, ((0, r - a.shape[0]), (0, c - a.shape[1])))

    return {
        "w1": pad2(params["w1"], input_dim, h1p).astype(jnp.bfloat16),
        "b1": pad2(params["b1"], 1, h1p),                 # f32, post-accumulation add
        "w2": pad2(params["w2"], h1p, h2p).astype(jnp.bfloat16),
        "b2": pad2(params["b2"], 1, h2p),
        "w3": pad2(params["w3"], h2p, out_dim).astype(jnp.bfloat16),
        "b3": params["b3"],                                # (1, out_dim) f32
    }


def classifier_forward(x, prepared, *, block_batch=1024):
    """Fused MLP forward over a batch-tiled Pallas grid.

    x:        (batch, input_dim) float32
    prepared: output of prepare_params (padded / bf16-cast weights).
    """
    batch, input_dim = x.shape
    h1p = prepared["w1"].shape[1]
    h2p = prepared["w2"].shape[1]
    out_dim = prepared["w3"].shape[1]

    # --- batch tiling --------------------------------------------------------
    #  * tiles are 16-row aligned (bf16 sublane pack)
    #  * large batches: ~block_batch rows per step (amortizes ~0.35us/step)
    #  * medium batches: at least 2 grid steps so both v7x TensorCores get work
    #  * the grid may overshoot `batch`; Pallas clips the ragged final block,
    #    so no wrapper-side pad of x and no padded-output slice are needed.
    if batch > block_batch:
        grid = _cdiv(batch, block_batch)
    elif batch >= 2 * ROW_ALIGN:
        grid = 2
    else:
        grid = 1
    tb = min(_round_up(_cdiv(batch, grid), ROW_ALIGN), _round_up(batch, ROW_ALIGN))
    grid = max(1, _cdiv(batch, tb))
    tb, grid = int(tb), int(grid)

    # Advisory cost estimate so XLA can schedule around the custom call.
    rows = grid * tb
    flops = 2 * rows * (input_dim * h1p + h1p * h2p + h2p * out_dim)
    transcendentals = rows * (h1p + h2p)
    bytes_accessed = (
        batch * input_dim * 4 + batch * out_dim * 4
        + sum(int(v.size) * v.dtype.itemsize for v in prepared.values()))

    # Weights/biases: constant block index => DMA'd once, VMEM-resident.
    def const(a):
        return pl.BlockSpec(a.shape, lambda i: (0, 0))

    out = pl.pallas_call(
        mlp_kernel,
        out_shape=jax.ShapeDtypeStruct((batch, out_dim), jnp.float32),
        grid=(grid,),
        in_specs=[
            pl.BlockSpec((tb, input_dim), lambda i: (i, 0)),   # x: batch-tiled
            const(prepared["w1"]), const(prepared["b1"]),
            const(prepared["w2"]), const(prepared["b2"]),
            const(prepared["w3"]), const(prepared["b3"]),
        ],
        out_specs=pl.BlockSpec((tb, out_dim), lambda i: (i, 0)),  # unpadded store
        compiler_params=pltpu.CompilerParams(
            dimension_semantics=("parallel",)),
        cost_estimate=pl.CostEstimate(
            flops=flops,
            transcendentals=transcendentals,
            bytes_accessed=bytes_accessed),
    )(x, prepared["w1"], prepared["b1"], prepared["w2"], prepared["b2"],
      prepared["w3"], prepared["b3"])
    return out


def init_params(key, input_dim, hidden_dims, output_dim):
    """PyTorch-style init U(-1/sqrt(fan_in), 1/sqrt(fan_in)); weights stored
    already transposed as (in_features, out_features)."""
    dims = [input_dim] + list(hidden_dims) + [output_dim]
    params = {}
    for i, (fan_in, fan_out) in enumerate(zip(dims[:-1], dims[1:]), start=1):
        key, kw, kb = jax.random.split(key, 3)
        bound = 1.0 / jnp.sqrt(jnp.float32(fan_in))
        params[f"w{i}"] = jax.random.uniform(
            kw, (fan_in, fan_out), jnp.float32, minval=-bound, maxval=bound)
        params[f"b{i}"] = jax.random.uniform(
            kb, (1, fan_out), jnp.float32, minval=-bound, maxval=bound)
    return params


def reference_forward(x, params):
    """Plain-JAX f32 reference for correctness checking."""
    h = jax.nn.sigmoid(x @ params["w1"] + params["b1"])
    h = jax.nn.sigmoid(h @ params["w2"] + params["b2"])
    return h @ params["w3"] + params["b3"]


if __name__ == "__main__":
    # Small tabular-MLP shapes consistent with the module.  batch=200 gives a
    # 2-step, 112-row-tile grid: exercises batch tiling, the v7x megacore
    # split, and ragged-final-block clipping (200 % 112 != 0).
    batch, input_dim, hidden_dims, output_dim = 200, 16, (32, 32), 4

    key = jax.random.PRNGKey(0)
    key, kx = jax.random.split(key)
    x = jax.random.normal(kx, (batch, input_dim), jnp.float32)
    params = init_params(key, input_dim, hidden_dims, output_dim)
    prepared = prepare_params(params)   # one-time pad/cast, off the hot path

    logits = classifier_forward(x, prepared, block_batch=1024)
    logits = jax.block_until_ready(logits)

    ref = reference_forward(x, params)
    assert logits.shape == (batch, output_dim)
    # bf16 matmul inputs => loosened tolerance vs the f32 reference.
    assert jnp.allclose(logits, ref, atol=2e-2, rtol=2e-2), "mismatch vs reference"

    print("KERNEL_OK")
</pallas_src>

<mosaic_0001>
module attributes {stable_mosaic.version = 11 : i64} {
  func.func @mlp_kernel(%arg0: i32, %arg1: memref<112x16xf32, #tpu.memory_space<vmem>>, %arg2: memref<16x128xbf16, #tpu.memory_space<vmem>>, %arg3: memref<1x128xf32, #tpu.memory_space<vmem>>, %arg4: memref<128x128xbf16, #tpu.memory_space<vmem>>, %arg5: memref<1x128xf32, #tpu.memory_space<vmem>>, %arg6: memref<128x4xbf16, #tpu.memory_space<vmem>>, %arg7: memref<1x4xf32, #tpu.memory_space<vmem>>, %arg8: memref<112x4xf32, #tpu.memory_space<vmem>>) attributes {dimension_semantics = [#tpu.dimension_semantics<parallel>], iteration_bounds = array<i64: 2>, scalar_prefetch = 0 : i64, scratch_operands = 0 : i64, tpu.core_type = #tpu.core_type<tc>, window_params = [{transform_indices = @transform_0, window_bounds = array<i64: 112, 16>}, {pipeline_mode = #tpu.pipeline_mode<synchronous>, transform_indices = @transform_1, window_bounds = array<i64: 16, 128>}, {pipeline_mode = #tpu.pipeline_mode<synchronous>, transform_indices = @transform_2, window_bounds = array<i64: 1, 128>}, {pipeline_mode = #tpu.pipeline_mode<synchronous>, transform_indices = @transform_3, window_bounds = array<i64: 128, 128>}, {pipeline_mode = #tpu.pipeline_mode<synchronous>, transform_indices = @transform_4, window_bounds = array<i64: 1, 128>}, {pipeline_mode = #tpu.pipeline_mode<synchronous>, transform_indices = @transform_5, window_bounds = array<i64: 128, 4>}, {pipeline_mode = #tpu.pipeline_mode<synchronous>, transform_indices = @transform_6, window_bounds = array<i64: 1, 4>}, {transform_indices = @transform_7, window_bounds = array<i64: 112, 4>}]} {
    %c0 = arith.constant 0 : index
    %c0_0 = arith.constant 0 : index
    %0 = vector.load %arg1[%c0, %c0_0] : memref<112x16xf32, #tpu.memory_space<vmem>>, vector<112x16xf32>
    %1 = arith.truncf %0 : vector<112x16xf32> to vector<112x16xbf16>
    %c0_1 = arith.constant 0 : index
    %c0_2 = arith.constant 0 : index
    %2 = vector.load %arg2[%c0_1, %c0_2] : memref<16x128xbf16, #tpu.memory_space<vmem>>, vector<16x128xbf16>
    %cst = arith.constant dense<0.000000e+00> : vector<112x128xf32>
    %3 = tpu.matmul %1, %2, %cst {dimension_numbers = #tpu.dot_dimension_numbers<[1], [0], [0], [1], [0, 0, 1, 1], [], []>} : vector<112x16xbf16>, vector<16x128xbf16>, vector<112x128xf32> -> vector<112x128xf32>
    %c0_3 = arith.constant 0 : index
    %c0_4 = arith.constant 0 : index
    %4 = vector.load %arg3[%c0_3, %c0_4] : memref<1x128xf32, #tpu.memory_space<vmem>>, vector<1x128xf32>
    %5 = vector.broadcast %4 : vector<1x128xf32> to vector<112x128xf32>
    %6 = arith.addf %3, %5 : vector<112x128xf32>
    %cst_5 = arith.constant 5.000000e-01 : f32
    %7 = vector.broadcast %cst_5 : f32 to vector<112x128xf32>
    %8 = arith.mulf %7, %6 : vector<112x128xf32>
    %9 = math.tanh %8 : vector<112x128xf32>
    %cst_6 = arith.constant 5.000000e-01 : f32
    %10 = vector.broadcast %cst_6 : f32 to vector<112x128xf32>
    %11 = arith.mulf %10, %9 : vector<112x128xf32>
    %cst_7 = arith.constant 5.000000e-01 : f32
    %12 = vector.broadcast %cst_7 : f32 to vector<112x128xf32>
    %13 = arith.addf %11, %12 : vector<112x128xf32>
    %14 = arith.truncf %13 : vector<112x128xf32> to vector<112x128xbf16>
    %c0_8 = arith.constant 0 : index
    %c0_9 = arith.constant 0 : index
    %15 = vector.load %arg4[%c0_8, %c0_9] : memref<128x128xbf16, #tpu.memory_space<vmem>>, vector<128x128xbf16>
    %cst_10 = arith.constant dense<0.000000e+00> : vector<112x128xf32>
    %16 = tpu.matmul %14, %15, %cst_10 {dimension_numbers = #tpu.dot_dimension_numbers<[1], [0], [0], [1], [0, 0, 1, 1], [], []>} : vector<112x128xbf16>, vector<128x128xbf16>, vector<112x128xf32> -> vector<112x128xf32>
    %c0_11 = arith.constant 0 : index
    %c0_12 = arith.constant 0 : index
    %17 = vector.load %arg5[%c0_11, %c0_12] : memref<1x128xf32, #tpu.memory_space<vmem>>, vector<1x128xf32>
    %18 = vector.broadcast %17 : vector<1x128xf32> to vector<112x128xf32>
    %19 = arith.addf %16, %18 : vector<112x128xf32>
    %cst_13 = arith.constant 5.000000e-01 : f32
    %20 = vector.broadcast %cst_13 : f32 to vector<112x128xf32>
    %21 = arith.mulf %20, %19 : vector<112x128xf32>
    %22 = math.tanh %21 : vector<112x128xf32>
    %cst_14 = arith.constant 5.000000e-01 : f32
    %23 = vector.broadcast %cst_14 : f32 to vector<112x128xf32>
    %24 = arith.mulf %23, %22 : vector<112x128xf32>
    %cst_15 = arith.constant 5.000000e-01 : f32
    %25 = vector.broadcast %cst_15 : f32 to vector<112x128xf32>
    %26 = arith.addf %24, %25 : vector<112x128xf32>
    %27 = arith.truncf %26 : vector<112x128xf32> to vector<112x128xbf16>
    %c0_16 = arith.constant 0 : index
    %c0_17 = arith.constant 0 : index
    %28 = vector.load %arg6[%c0_16, %c0_17] : memref<128x4xbf16, #tpu.memory_space<vmem>>, vector<128x4xbf16>
    %cst_18 = arith.constant dense<0.000000e+00> : vector<112x4xf32>
    %29 = tpu.matmul %27, %28, %cst_18 {dimension_numbers = #tpu.dot_dimension_numbers<[1], [0], [0], [1], [0, 0, 1, 1], [], []>} : vector<112x128xbf16>, vector<128x4xbf16>, vector<112x4xf32> -> vector<112x4xf32>
    %c0_19 = arith.constant 0 : index
    %c0_20 = arith.constant 0 : index
    %30 = vector.load %arg7[%c0_19, %c0_20] : memref<1x4xf32, #tpu.memory_space<vmem>>, vector<1x4xf32>
    %31 = vector.broadcast %30 : vector<1x4xf32> to vector<112x4xf32>
    %32 = arith.addf %29, %31 : vector<112x4xf32>
    %c0_21 = arith.constant 0 : index
    %c0_22 = arith.constant 0 : index
    %33 = vector.load %arg8[%c0_21, %c0_22] : memref<112x4xf32, #tpu.memory_space<vmem>>, vector<112x4xf32>
    tpu.vector_store %arg8[%c0_21, %c0_22], %32 {strides = array<i32>} : memref<112x4xf32, #tpu.memory_space<vmem>>, vector<112x4xf32>,
    return
  }
  func.func @transform_0(%arg0: i32) -> (i32, i32) {
    %c0_i32 = arith.constant 0 : i32
    %c0_i32_0 = arith.constant 0 : i32
    return %arg0, %c0_i32 : i32, i32
  }
  func.func @transform_1(%arg0: i32) -> (i32, i32) {
    %c0_i32 = arith.constant 0 : i32
    %c0_i32_0 = arith.constant 0 : i32
    %c0_i32_1 = arith.constant 0 : i32
    return %c0_i32, %c0_i32_0 : i32, i32
  }
  func.func @transform_2(%arg0: i32) -> (i32, i32) {
    %c0_i32 = arith.constant 0 : i32
    %c0_i32_0 = arith.constant 0 : i32
    %c0_i32_1 = arith.constant 0 : i32
    return %c0_i32, %c0_i32_0 : i32, i32
  }
  func.func @transform_3(%arg0: i32) -> (i32, i32) {
    %c0_i32 = arith.constant 0 : i32
    %c0_i32_0 = arith.constant 0 : i32
    %c0_i32_1 = arith.constant 0 : i32
    return %c0_i32, %c0_i32_0 : i32, i32
  }
  func.func @transform_4(%arg0: i32) -> (i32, i32) {
    %c0_i32 = arith.constant 0 : i32
    %c0_i32_0 = arith.constant 0 : i32
    %c0_i32_1 = arith.constant 0 : i32
    return %c0_i32, %c0_i32_0 : i32, i32
  }
  func.func @transform_5(%arg0: i32) -> (i32, i32) {
    %c0_i32 = arith.constant 0 : i32
    %c0_i32_0 = arith.constant 0 : i32
    %c0_i32_1 = arith.constant 0 : i32
    return %c0_i32, %c0_i32_0 : i32, i32
  }
  func.func @transform_6(%arg0: i32) -> (i32, i32) {
    %c0_i32 = arith.constant 0 : i32
    %c0_i32_0 = arith.constant 0 : i32
    %c0_i32_1 = arith.constant 0 : i32
    return %c0_i32, %c0_i32_0 : i32, i32
  }
  func.func @transform_7(%arg0: i32) -> (i32, i32) {
    %c0_i32 = arith.constant 0 : i32
    %c0_i32_0 = arith.constant 0 : i32
    return %arg0, %c0_i32 : i32, i32
  }
}

</mosaic_0001>

<bundles_post_ra>
// kernel: tpu_custom_call.1
= control target key start
LH: loop header
LB: loop body
LE: loop exit
PB: predicated region body
PF: predicated region fallthrough
CT: control target
= control target key end

     0   :  { %s1681_s24 = smov 0   ;;  %s1683_s25 = smov 0   ;;  %s2015_s0 = inlined_call_operand.vmem [shape: f32[200,16], index: 0, kind: input, shape index: {}]   ;;  %s2016_s1 = inlined_call_operand.vmem [shape: bf16[16,128], index: 1, kind: input, shape index: {}]   ;;  %s2017_s2 = inlined_call_operand.vmem [shape: f32[1,128], index: 2, kind: input, shape index: {}]   ;;  %s2018_s3 = inlined_call_operand.vmem [shape: bf16[128,128], index: 3, kind: input, shape index: {}]   ;;  %s2019_s4 = inlined_call_operand.vmem [shape: f32[1,128], index: 4, kind: input, shape index: {}]   ;;  %s2020_s5 = inlined_call_operand.vmem [shape: bf16[128,4], index: 5, kind: input, shape index: {}]   ;;  %s2021_s6 = inlined_call_operand.vmem [shape: f32[1,4], index: 6, kind: input, shape index: {}]   ;;  %s2022_s7 = inlined_call_operand.vmem [shape: f32[200,4], index: 7, kind: output, shape index: {}]  }
   0x1   :  { %s1685_s26 = smov 0  }
   0x2 LB: > { %s1694_s27 = sadd.s32 4294967295, %s1605_s26   ;;  %s1696_s28 = sadd.s32 1, %s1605_s26   ;;  %s1605_s26 = sphi %s1685_s26, %s2029_s26   ;;  %s1601_s25 = sphi %s1683_s25, %s2028_s25   ;;  %s1597_s24 = sphi %s1681_s24, %s2027_s24  }
   0x3   : > { %s173_s29 = ssub.s32 %s1605_s26, %s1696_s28  ;;  %s176_s30 = sadd.s32 1, %s1601_s25 }
   0x4   : > { %p174_p0 = scmp.eq.s32.totalorder %s173_s29, 0  ;;  %p186_p1 = scmp.ne.s32.totalorder %s1601_s25, %s1597_s24 }
   0x5   : > { %p187_p2 = scmp.eq.s32.totalorder %s1694_s27, 1  ;;  %p1182_p3 = scmp.ge.s32.totalorder %s1605_s26, 1 }
   0x6   : > { %s1704_s8 = scalar_select %p174_p0, %s1601_s25, %s176_s30  }
   0x7   : > { %p1706_p4 = por %p187_p2, %p186_p1  ;;  %p246_p5 = scmp.lt.s32.totalorder %s1605_s26, 3 }
   0x9   : > { %p247_p6 = pnand %p1182_p3, %p246_p5 }
   0xa   : > { %s1715_s12 = smul.u32 (!%p247_p6), 14, %s1694_s27  ;;  %s278_s22 = sand.u32 (!%p247_p6), 1, %s1597_s24  }
   0xb   : > { %250 = sbr.rel (%p247_p6) target bundleno = 766 (0x2fe), region = 48 }
   0xc   : > { %p286_p7 = scmp.lt.s32.totalorder (!%p247_p6), %s1715_s12, 24  ;;  %s1382_s23 = smul.u32 (!%p247_p6), 112, %s278_s22 }
   0xe   : > { %s1894_s30 = scalar_lea.vmem (!%p247_p6), [#allocation2], %s1382_s23  }
  0x10   : > { %v1474_v0 = vld [vmem:[%s2016_s1] sm:$0xff]   ;;  %v1639_v1 = vmov 0.0   ;;  %vm1640_vm0 = vmmov 0   ;;  %s287_s13 = scalar_select %p286_p7, %s1715_s12, 24  ;;  %vm337_vm1 = vcmask 130048   ;;  %v1475_v7 = vld [vmem:[%s2018_s3 + $0x38] sm:$0xff]  }
  0x11   : > { %1262 = vmatprep.subr.bf16.mxu0 %v1639_v1  ;;  %1380 = vmatprep.subr.bf16.mxu1 %v1639_v1  ;;  %v1476_v24 = vld [vmem:[%s2018_s3 + $0x30] sm:$0xff]   ;;  %v1477_v25 = vld [vmem:[%s2018_s3 + $0x28] sm:$0xff]   ;;  %v1478_v26 = vld [vmem:[%s2018_s3 + $0x20] sm:$0xff]   ;;  %vm894_vm2 = vcmask 31744   ;;  %s917_s24 = ssub.s32 (%p1706_p4), 25, %s1715_s12  ;;  %s1223_s10 = smul.u32 (%p1706_p4), 112, %s1694_s27 }
  0x12   : > { %1263 = vmatpush3.bf16.msra.mxu0 %v1474_v0  ;;  %1264 = vmatprep.mubr.msk.bf16.mxu0 %vm1640_vm0, %v1639_v1  ;;  %s1183_s14 = sshll.u32 %s287_s13, 3  ;;  %v1479_v27 = vld [vmem:[%s2018_s3 + $0x18] sm:$0xff]   ;;  %v1480_v28 = vld [vmem:[%s2018_s3 + $0x10] sm:$0xff]   ;;  %v1481_v29 = vld [vmem:[%s2018_s3 + $0x8] sm:$0xff]   ;;  %p918_p8 = scmp.lt.s32.totalorder (%p1706_p4), %s917_s24, 14 }
  0x13   : > { %1381 = vmatpush3.bf16.msra.mxu1 %v1474_v0  ;;  %1280 = vmatprep.mubr.msk.bf16.mxu1 %vm1640_vm0, %v1639_v1  ;;  %s1729_s17 = scalar_lea.vmem %s2015_s0, %s1183_s14  ;;  %v1482_v30 = vld [vmem:[%s2018_s3] sm:$0xff]   ;;  %v1483_v31 = vld [vmem:[%s2020_s5 + $0x38] sm:$0xff]   ;;  %s1931_s14 = scalar_lea.vmem (%p1706_p4), %s2022_s7, %s1223_s10  }
  0x14   : > { %1292 = vmatprep.subr.bf16.mxu1 %v1639_v1  ;;  %1336 = vmatprep.subr.bf16.mxu0 %v1639_v1  ;;  %v301_v2 = vld [vmem:[%s1729_s17] sm:$0xff]  ;;  %v302_v3 = vld [vmem:[%s1729_s17 + $0x8] sm:$0xff]  ;;  %v303_v8 = vld [vmem:[%s1729_s17 + $0x10] sm:$0xff] }
  0x15   : > { %v315_v4 = vpack.c.bf16 %v302_v3, %v301_v2  ;;  %v309_v5 = vld [vmem:[%s1729_s17 + $0x40] sm:$0xff]  ;;  %v310_v6 = vld [vmem:[%s1729_s17 + $0x48] sm:$0xff]  ;;  %v304_v9 = vld [vmem:[%s1729_s17 + $0x18] sm:$0xff] }
  0x16   : > { %v319_v10 = vpack.c.bf16 %v310_v6, %v309_v5  ;;  %v311_v11 = vld [vmem:[%s1729_s17 + $0x50] sm:$0xff]  ;;  %v312_v12 = vld [vmem:[%s1729_s17 + $0x58] sm:$0xff]  ;;  %v316_v13 = vpack.c.bf16 %v304_v9, %v303_v8  ;;  %v305_v15 = vld [vmem:[%s1729_s17 + $0x20] sm:$0xff] }
  0x17   : > { %1265 = vmatmul.mubr.msk.bf16.vlgmr.msra.gmra.mxu0 %vm337_vm1, %v315_v4  ;;  %v320_v14 = vpack.c.bf16 %v312_v12, %v311_v11  ;;  %v306_v16 = vld [vmem:[%s1729_s17 + $0x28] sm:$0xff]  ;;  %v313_v18 = vld [vmem:[%s1729_s17 + $0x60] sm:$0xff]  ;;  %v307_v21 = vld [vmem:[%s1729_s17 + $0x30] sm:$0xff] }
  0x18   : > { %1268 = vmatprep.mubr.msk.bf16.mxu0 %vm1640_vm0, %v1639_v1  ;;  %1281 = vmatmul.mubr.msk.bf16.vlgmr.msra.gmra.mxu1 %vm337_vm1, %v319_v10  ;;  %v317_v17 = vpack.c.bf16 %v306_v16, %v305_v15  ;;  %v314_v19 = vld [vmem:[%s1729_s17 + $0x68] sm:$0xff]  ;;  %v308_v22 = vld [vmem:[%s1729_s17 + $0x38] sm:$0xff]  ;;  %v1804_v32 = vld [vmem:[%s2017_s2] ss:$0 sm:$0xff] }
  0x19   : > { %1284 = vmatprep.mubr.msk.bf16.mxu1 %vm1640_vm0, %v1639_v1  ;;  %1293 = vmatpush3.bf16.msra.mxu1 %v1475_v7  ;;  %v321_v20 = vpack.c.bf16 %v314_v19, %v313_v18  ;;  %v318_v23 = vpack.c.bf16 %v308_v22, %v307_v21 }
  0x1a   : > { %1294 = vmatprep.subr.bf16.mxu1 %v1639_v1  ;;  %1337 = vmatpush3.bf16.msra.mxu0 %v1483_v31 }
  0x1b   : > { %1338 = vmatprep.subr.bf16.mxu0 %v1639_v1 }
  0x1d   : > { %1295 = vmatpush3.bf16.msra.mxu1 %v1476_v24 }
  0x1e   : > { %1296 = vmatprep.subr.bf16.mxu1 %v1639_v1 }
  0x1f   : > { %1269 = vmatmul.mubr.msk.bf16.gmra.mxu0 %vm337_vm1, %v316_v13 }
  0x20   : > { %1272 = vmatprep.mubr.msk.bf16.mxu0 %vm1640_vm0, %v1639_v1  ;;  %1285 = vmatmul.mubr.msk.bf16.gmra.mxu1 %vm337_vm1, %v320_v14 }
  0x21   : > { %1288 = vmatprep.mubr.msk.bf16.mxu1 %vm1640_vm0, %v1639_v1  ;;  %1297 = vmatpush3.bf16.msra.mxu1 %v1477_v25 }
  0x22   : > { %1298 = vmatprep.subr.bf16.mxu1 %v1639_v1 }
  0x25   : > { %1299 = vmatpush3.bf16.msra.mxu1 %v1478_v26 }
  0x26   : > { %1300 = vmatprep.subr.bf16.mxu1 %v1639_v1 }
  0x27   : > { %1273 = vmatmul.mubr.msk.bf16.gmra.mxu0 %vm337_vm1, %v317_v17 }
  0x28   : > { %1276 = vmatprep.mubr.msk.bf16.mxu0 %vm1640_vm0, %v1639_v1  ;;  %1289 = vmatmul.mubr.msk.bf16.gmra.mxu1 %vm337_vm1, %v321_v20 }
  0x29   : > { %1308 = vmatprep.mubr.msk.bf16.mxu1 %vm1640_vm0, %v1639_v1  ;;  %1301 = vmatpush3.bf16.msra.mxu1 %v1479_v27 }
  0x2a   : > { %1302 = vmatprep.subr.bf16.mxu1 %v1639_v1 }
  0x2d   : > { %1303 = vmatpush3.bf16.msra.mxu1 %v1480_v28 }
  0x2e   : > { %1304 = vmatprep.subr.bf16.mxu1 %v1639_v1 }
  0x2f   : > { %1277 = vmatmul.mubr.msk.bf16.gmra.mxu0 %vm337_vm1, %v318_v23 }
  0x30   : > { %1352 = vmatprep.mubr.msk.bf16.mxu0 %vm1640_vm0, %v1639_v1 }
  0x31   : > { %1305 = vmatpush3.bf16.msra.mxu1 %v1481_v29 }
  0x32   : > { %1306 = vmatprep.subr.bf16.mxu1 %v1639_v1 }
  0x35   : > { %1307 = vmatpush3.bf16.msra.mxu1 %v1482_v30 }
  0xd7   : > { %v393_v33 = vpop.f32.mrf.mxu0 }
  0xd8   : > { %v394_v34 = vadd.f32 %v1804_v32, %v393_v33  ;;  %v425_v37 = vpop.f32.mrf.mxu1 }
  0xd9   : > { %v1266_v35 = vpop.f32.mrf.mxu0  ;;  %v426_v16 = vadd.f32 %v1804_v32, %v425_v37 }
  0xda   : > { %v448_v36 = vmul.f32 0.5, %v394_v34  ;;  %v1282_v40 = vpop.f32.mrf.mxu1 }
  0xdb   : > { %v396_v38 = vpop.f32.mrf.mxu0  ;;  %v456_v24 = vmul.f32 0.5, %v426_v16  ;;  %v1488_v16 = vld [vmem:[%s2020_s5 + $0x10] sm:$0xff]  }
  0xdc   : > { %1491 = vtanh.f32 %v448_v36  ;;  %v397_v39 = vadd.f32 %v1804_v32, %v396_v38  ;;  %v428_v43 = vpop.f32.mrf.mxu1 }
  0xdd   : > { %v1267_v41 = vpop.f32.mrf.mxu0  ;;  %v429_v19 = vadd.f32 %v1804_v32, %v428_v43 }
  0xde   : > { %v449_v42 = vmul.f32 0.5, %v397_v39  ;;  %v1283_v46 = vpop.f32.mrf.mxu1 }
  0xdf   : > { %v401_v44 = vpop.f32.mrf.mxu0  ;;  %v457_v28 = vmul.f32 0.5, %v429_v19  ;;  %v1862_v19 = vld [vmem:[%s2019_s4] ss:$0 sm:$0xff] }
  0xe0   : > { %1493 = vtanh.f32 %v449_v42  ;;  %v402_v45 = vadd.f32 %v1804_v32, %v401_v44  ;;  %v433_v49 = vpop.f32.mrf.mxu1 }
  0xe1   : > { %v1270_v47 = vpop.f32.mrf.mxu0  ;;  %v434_v33 = vadd.f32 %v1804_v32, %v433_v49 }
  0xe2   : > { %v450_v48 = vmul.f32 0.5, %v402_v45  ;;  %v1286_v52 = vpop.f32.mrf.mxu1 }
  0xe3   : > { %v404_v50 = vpop.f32.mrf.mxu0  ;;  %v458_v38 = vmul.f32 0.5, %v434_v33 }
  0xe4   : > { %1495 = vtanh.f32 %v450_v48  ;;  %v405_v51 = vadd.f32 %v1804_v32, %v404_v50  ;;  %v436_v55 = vpop.f32.mrf.mxu1 }
  0xe5   : > { %v1271_v53 = vpop.f32.mrf.mxu0  ;;  %v437_v35 = vadd.f32 %v1804_v32, %v436_v55 }
  0xe6   : > { %v451_v54 = vmul.f32 0.5, %v405_v51  ;;  %v1287_v58 = vpop.f32.mrf.mxu1 }
  0xe7   : > { %v409_v56 = vpop.f32.mrf.mxu0  ;;  %v459_v40 = vmul.f32 0.5, %v437_v35 }
  0xe8   : > { %1497 = vtanh.f32 %v451_v54  ;;  %v410_v57 = vadd.f32 %v1804_v32, %v409_v56  ;;  %v441_v62 = vpop.f32.mrf.mxu1 }
  0xe9   : > { %v1492_v59 = vpop.eup %1491  ;;  %v1274_v60 = vpop.f32.mrf.mxu0  ;;  %v442_v44 = vadd.f32 %v1804_v32, %v441_v62 }
  0xea   : > { %v452_v61 = vmul.f32 0.5, %v410_v57  ;;  %v476_v0 = vmul.f32 0.5, %v1492_v59  ;;  %v1290_v3 = vpop.f32.mrf.mxu1 }
  0xeb   : > { %v412_v63 = vpop.f32.mrf.mxu0  ;;  %v460_v49 = vmul.f32 0.5, %v442_v44 }
  0xec   : > { %1499 = vtanh.f32 %v452_v61  ;;  %v413_v2 = vadd.f32 %v1804_v32, %v412_v63  ;;  %v444_v8 = vpop.f32.mrf.mxu1  ;;  %v490_v10 = vadd.f32 0.5, %v476_v0 }
  0xed   : > { %v1494_v4 = vpop.eup %1493  ;;  %v1275_v5 = vpop.f32.mrf.mxu0  ;;  %v445_v46 = vadd.f32 %v1804_v32, %v444_v8 }
  0xee   : > { %v477_v6 = vmul.f32 0.5, %v1494_v4  ;;  %v453_v7 = vmul.f32 0.5, %v413_v2  ;;  %v1291_v13 = vpop.f32.mrf.mxu1 }
  0xef   : > { %v417_v9 = vpop.f32.mrf.mxu0  ;;  %v461_v52 = vmul.f32 0.5, %v445_v46  ;;  %v1485_v13 = vld [vmem:[%s2020_s5 + $0x28] sm:$0xff]  }
  0xf0   : > { %v491_v11 = vadd.f32 0.5, %v477_v6  ;;  %1501 = vtanh.f32 %v453_v7  ;;  %v418_v12 = vadd.f32 %v1804_v32, %v417_v9 }
  0xf1   : > { %v1496_v14 = vpop.eup %1495  ;;  %v1278_v15 = vpop.f32.mrf.mxu0 }
  0xf2   : > { %v504_v17 = vpack.c.bf16 %v491_v11, %v490_v10  ;;  %v454_v18 = vmul.f32 0.5, %v418_v12  ;;  %v478_v21 = vmul.f32 0.5, %v1496_v14  ;;  %v1484_v12 = vld [vmem:[%s2020_s5 + $0x30] sm:$0xff]   ;;  %v1486_v14 = vld [vmem:[%s2020_s5 + $0x20] sm:$0xff]   ;;  %v1487_v15 = vld [vmem:[%s2020_s5 + $0x18] sm:$0xff]  }
  0xf3   : > { %v420_v20 = vpop.f32.mrf.mxu0  ;;  %1339 = vmatpush3.bf16.msra.mxu0 %v1484_v12 }
  0xf4   : > { %1503 = vtanh.f32 %v454_v18  ;;  %v421_v22 = vadd.f32 %v1804_v32, %v420_v20  ;;  %1309 = vmatmul.mubr.bf16.vlgmr.msra.gmra.mxu1 %v504_v17  ;;  %v492_v29 = vadd.f32 0.5, %v478_v21  ;;  %1340 = vmatprep.subr.bf16.mxu0 %v1639_v1  ;;  %v1489_v17 = vld [vmem:[%s2020_s5 + $0x8] sm:$0xff]   ;;  %v1490_v18 = vld [vmem:[%s2020_s5] sm:$0xff]  }
  0xf5   : > { %v1498_v23 = vpop.eup %1497  ;;  %v1279_v25 = vpop.f32.mrf.mxu0  ;;  %1312 = vmatprep.mubr.msk.bf16.mxu1 %vm1640_vm0, %v1639_v1 }
  0xf6   : > { %v479_v26 = vmul.f32 0.5, %v1498_v23  ;;  %v455_v27 = vmul.f32 0.5, %v421_v22 }
  0xf7   : > { %1341 = vmatpush3.bf16.msra.mxu0 %v1485_v13 }
  0xf8   : > { %v493_v30 = vadd.f32 0.5, %v479_v26  ;;  %1505 = vtanh.f32 %v455_v27  ;;  %1342 = vmatprep.subr.bf16.mxu0 %v1639_v1 }
  0xf9   : > { %v1500_v31 = vpop.eup %1499  ;;  %1507 = vtanh.f32 %v456_v24 }
  0xfa   : > { %1509 = vtanh.f32 %v457_v28  ;;  %v505_v34 = vpack.c.bf16 %v493_v30, %v492_v29  ;;  %v480_v36 = vmul.f32 0.5, %v1500_v31 }
  0xfb   : > { %1511 = vtanh.f32 %v458_v38  ;;  %1343 = vmatpush3.bf16.msra.mxu0 %v1486_v14 }
  0xfc   : > { %1313 = vmatmul.mubr.bf16.gmra.mxu1 %v505_v34  ;;  %v494_v41 = vadd.f32 0.5, %v480_v36  ;;  %1513 = vtanh.f32 %v459_v40  ;;  %1344 = vmatprep.subr.bf16.mxu0 %v1639_v1 }
  0xfd   : > { %v1502_v37 = vpop.eup %1501  ;;  %1316 = vmatprep.mubr.msk.bf16.mxu1 %vm1640_vm0, %v1639_v1  ;;  %1515 = vtanh.f32 %v460_v49 }
  0xfe   : > { %v481_v39 = vmul.f32 0.5, %v1502_v37  ;;  %1517 = vtanh.f32 %v461_v52 }
  0xff   : > { %1345 = vmatpush3.bf16.msra.mxu0 %v1487_v15 }
 0x100   : > { %v495_v42 = vadd.f32 0.5, %v481_v39  ;;  %1346 = vmatprep.subr.bf16.mxu0 %v1639_v1 }
 0x101   : > { %v1504_v43 = vpop.eup %1503 }
 0x102   : > { %v506_v45 = vpack.c.bf16 %v495_v42, %v494_v41  ;;  %v482_v47 = vmul.f32 0.5, %v1504_v43 }
 0x103   : > { %1347 = vmatpush3.bf16.msra.mxu0 %v1488_v16 }
 0x104   : > { %1317 = vmatmul.mubr.bf16.gmra.mxu1 %v506_v45  ;;  %v496_v54 = vadd.f32 0.5, %v482_v47  ;;  %1348 = vmatprep.subr.bf16.mxu0 %v1639_v1 }
 0x105   : > { %v1506_v48 = vpop.eup %1505  ;;  %1320 = vmatprep.mubr.msk.bf16.mxu1 %vm1640_vm0, %v1639_v1 }
 0x106   : > { %v1508_v50 = vpop.eup %1507  ;;  %v483_v51 = vmul.f32 0.5, %v1506_v48 }
 0x107   : > { %v1510_v53 = vpop.eup %1509  ;;  %v484_v56 = vmul.f32 0.5, %v1508_v50  ;;  %1349 = vmatpush3.bf16.msra.mxu0 %v1489_v17 }
 0x108   : > { %v497_v55 = vadd.f32 0.5, %v483_v51  ;;  %v485_v57 = vmul.f32 0.5, %v1510_v53  ;;  %v1512_v32 = vpop.eup %1511  ;;  %1350 = vmatprep.subr.bf16.mxu0 %v1639_v1 }
 0x109   : > { %v498_v59 = vadd.f32 0.5, %v484_v56  ;;  %v1514_v61 = vpop.eup %1513  ;;  %v486_v62 = vmul.f32 0.5, %v1512_v32 }
 0x10a   : > { %v507_v58 = vpack.c.bf16 %v497_v55, %v496_v54  ;;  %v499_v60 = vadd.f32 0.5, %v485_v57  ;;  %v487_v63 = vmul.f32 0.5, %v1514_v61  ;;  %v1516_v2 = vpop.eup %1515 }
 0x10b   : > { %v500_v3 = vadd.f32 0.5, %v486_v62  ;;  %v1518_v5 = vpop.eup %1517  ;;  %v488_v6 = vmul.f32 0.5, %v1516_v2  ;;  %1351 = vmatpush3.bf16.msra.mxu0 %v1490_v18 }
 0x10c   : > { %1321 = vmatmul.mubr.bf16.gmra.mxu1 %v507_v58  ;;  %v508_v0 = vpack.c.bf16 %v499_v60, %v498_v59  ;;  %v501_v4 = vadd.f32 0.5, %v487_v63  ;;  %v489_v7 = vmul.f32 0.5, %v1518_v5 }
 0x10d   : > { %1324 = vmatprep.mubr.msk.bf16.mxu1 %vm1640_vm0, %v1639_v1  ;;  %v502_v9 = vadd.f32 0.5, %v488_v6 }
 0x10e   : > { %v509_v8 = vpack.c.bf16 %v501_v4, %v500_v3  ;;  %v503_v10 = vadd.f32 0.5, %v489_v7 }
 0x110   : > { %v510_v11 = vpack.c.bf16 %v503_v10, %v502_v9 }
 0x114   : > { %1325 = vmatmul.mubr.bf16.gmra.mxu1 %v508_v0 }
 0x115   : > { %1328 = vmatprep.mubr.msk.bf16.mxu1 %vm1640_vm0, %v1639_v1 }
 0x11c   : > { %1329 = vmatmul.mubr.bf16.gmra.mxu1 %v509_v8 }
 0x11d   : > { %1332 = vmatprep.mubr.msk.bf16.mxu1 %vm1640_vm0, %v1639_v1 }
 0x124   : > { %1333 = vmatmul.mubr.bf16.gmra.mxu1 %v510_v11 }
 0x1b4   : > { %v616_v20 = vpop.f32.mrf.mxu1 }
 0x1b5   : > { %v617_v21 = vadd.f32 %v1862_v19, %v616_v20 }
 0x1b6   : > { %v1310_v22 = vpop.f32.mrf.mxu1 }
 0x1b7   : > { %v671_v23 = vmul.f32 0.5, %v617_v21 }
 0x1b8   : > { %v619_v24 = vpop.f32.mrf.mxu1 }
 0x1b9   : > { %1519 = vtanh.f32 %v671_v23  ;;  %v620_v25 = vadd.f32 %v1862_v19, %v619_v24 }
 0x1ba   : > { %v1311_v26 = vpop.f32.mrf.mxu1 }
 0x1bb   : > { %v672_v27 = vmul.f32 0.5, %v620_v25 }
 0x1bc   : > { %v624_v28 = vpop.f32.mrf.mxu1 }
 0x1bd   : > { %1521 = vtanh.f32 %v672_v27  ;;  %v625_v29 = vadd.f32 %v1862_v19, %v624_v28 }
 0x1be   : > { %v1314_v30 = vpop.f32.mrf.mxu1 }
 0x1bf   : > { %v673_v31 = vmul.f32 0.5, %v625_v29 }
 0x1c0   : > { %v627_v33 = vpop.f32.mrf.mxu1 }
 0x1c1   : > { %1523 = vtanh.f32 %v673_v31  ;;  %v628_v34 = vadd.f32 %v1862_v19, %v627_v33 }
 0x1c2   : > { %v1315_v35 = vpop.f32.mrf.mxu1 }
 0x1c3   : > { %v674_v36 = vmul.f32 0.5, %v628_v34 }
 0x1c4   : > { %v632_v37 = vpop.f32.mrf.mxu1 }
 0x1c5   : > { %1525 = vtanh.f32 %v674_v36  ;;  %v633_v38 = vadd.f32 %v1862_v19, %v632_v37 }
 0x1c6   : > { %v1520_v39 = vpop.eup %1519  ;;  %v1318_v40 = vpop.f32.mrf.mxu1 }
 0x1c7   : > { %v675_v41 = vmul.f32 0.5, %v633_v38  ;;  %v699_v43 = vmul.f32 0.5, %v1520_v39 }
 0x1c8   : > { %v635_v42 = vpop.f32.mrf.mxu1 }
 0x1c9   : > { %1527 = vtanh.f32 %v675_v41  ;;  %v636_v44 = vadd.f32 %v1862_v19, %v635_v42  ;;  %v713_v50 = vadd.f32 0.5, %v699_v43 }
 0x1ca   : > { %v1522_v45 = vpop.eup %1521  ;;  %v1319_v46 = vpop.f32.mrf.mxu1 }
 0x1cb   : > { %v700_v47 = vmul.f32 0.5, %v1522_v45  ;;  %v676_v48 = vmul.f32 0.5, %v636_v44 }
 0x1cc   : > { %v640_v49 = vpop.f32.mrf.mxu1 }
 0x1cd   : > { %v714_v51 = vadd.f32 0.5, %v700_v47  ;;  %1529 = vtanh.f32 %v676_v48  ;;  %v641_v52 = vadd.f32 %v1862_v19, %v640_v49 }
 0x1ce   : > { %v1524_v53 = vpop.eup %1523  ;;  %v1322_v54 = vpop.f32.mrf.mxu1 }
 0x1cf   : > { %v727_v55 = vpack.c.bf16 %v714_v51, %v713_v50  ;;  %v677_v56 = vmul.f32 0.5, %v641_v52  ;;  %v701_v58 = vmul.f32 0.5, %v1524_v53 }
 0x1d0   : > { %v643_v57 = vpop.f32.mrf.mxu1 }
 0x1d1   : > { %1531 = vtanh.f32 %v677_v56  ;;  %v644_v32 = vadd.f32 %v1862_v19, %v643_v57  ;;  %1353 = vmatmul.mubr.bf16.vlgmr.msra.gmra.mxu0 %v727_v55  ;;  %v715_v0 = vadd.f32 0.5, %v701_v58 }
 0x1d2   : > { %v1526_v59 = vpop.eup %1525  ;;  %v1323_v60 = vpop.f32.mrf.mxu1  ;;  %1356 = vmatprep.mubr.msk.bf16.mxu0 %vm1640_vm0, %v1639_v1 }
 0x1d3   : > { %v702_v61 = vmul.f32 0.5, %v1526_v59  ;;  %v678_v62 = vmul.f32 0.5, %v644_v32 }
 0x1d4   : > { %v648_v63 = vpop.f32.mrf.mxu1 }
 0x1d5   : > { %v716_v2 = vadd.f32 0.5, %v702_v61  ;;  %1533 = vtanh.f32 %v678_v62  ;;  %v649_v3 = vadd.f32 %v1862_v19, %v648_v63  ;;  %v1202_v62 = vld [vmem:[%s2021_s6] ss:$0 sm:$0xff] }
 0x1d6   : > { %v1528_v4 = vpop.eup %1527  ;;  %v1326_v5 = vpop.f32.mrf.mxu1 }
 0x1d7   : > { %v679_v6 = vmul.f32 0.5, %v649_v3  ;;  %v728_v7 = vpack.c.bf16 %v716_v2, %v715_v0  ;;  %v703_v9 = vmul.f32 0.5, %v1528_v4 }
 0x1d8   : > { %v651_v8 = vpop.f32.mrf.mxu1 }
 0x1d9   : > { %1535 = vtanh.f32 %v679_v6  ;;  %v652_v10 = vadd.f32 %v1862_v19, %v651_v8  ;;  %1357 = vmatmul.mubr.bf16.gmra.mxu0 %v728_v7  ;;  %v717_v16 = vadd.f32 0.5, %v703_v9 }
 0x1da   : > { %v1530_v11 = vpop.eup %1529  ;;  %v1327_v12 = vpop.f32.mrf.mxu1  ;;  %1360 = vmatprep.mubr.msk.bf16.mxu0 %vm1640_vm0, %v1639_v1 }
 0x1db   : > { %v704_v13 = vmul.f32 0.5, %v1530_v11  ;;  %v680_v14 = vmul.f32 0.5, %v652_v10 }
 0x1dc   : > { %v656_v15 = vpop.f32.mrf.mxu1 }
 0x1dd   : > { %v718_v17 = vadd.f32 0.5, %v704_v13  ;;  %1537 = vtanh.f32 %v680_v14  ;;  %v657_v18 = vadd.f32 %v1862_v19, %v656_v15 }
 0x1de   : > { %v1532_v20 = vpop.eup %1531  ;;  %v1330_v21 = vpop.f32.mrf.mxu1 }
 0x1df   : > { %v681_v22 = vmul.f32 0.5, %v657_v18  ;;  %v729_v23 = vpack.c.bf16 %v718_v17, %v717_v16  ;;  %v705_v25 = vmul.f32 0.5, %v1532_v20 }
 0x1e0   : > { %v659_v24 = vpop.f32.mrf.mxu1 }
 0x1e1   : > { %1539 = vtanh.f32 %v681_v22  ;;  %v660_v26 = vadd.f32 %v1862_v19, %v659_v24  ;;  %1361 = vmatmul.mubr.bf16.gmra.mxu0 %v729_v23  ;;  %v719_v33 = vadd.f32 0.5, %v705_v25 }
 0x1e2   : > { %v1534_v27 = vpop.eup %1533  ;;  %v1331_v28 = vpop.f32.mrf.mxu1  ;;  %1364 = vmatprep.mubr.msk.bf16.mxu0 %vm1640_vm0, %v1639_v1 }
 0x1e3   : > { %v706_v29 = vmul.f32 0.5, %v1534_v27  ;;  %v682_v30 = vmul.f32 0.5, %v660_v26 }
 0x1e4   : > { %v664_v31 = vpop.f32.mrf.mxu1 }
 0x1e5   : > { %v720_v34 = vadd.f32 0.5, %v706_v29  ;;  %1541 = vtanh.f32 %v682_v30  ;;  %v665_v35 = vadd.f32 %v1862_v19, %v664_v31 }
 0x1e6   : > { %v1536_v36 = vpop.eup %1535  ;;  %v1334_v37 = vpop.f32.mrf.mxu1 }
 0x1e7   : > { %v683_v38 = vmul.f32 0.5, %v665_v35  ;;  %v730_v39 = vpack.c.bf16 %v720_v34, %v719_v33  ;;  %v707_v41 = vmul.f32 0.5, %v1536_v36 }
 0x1e8   : > { %v667_v40 = vpop.f32.mrf.mxu1 }
 0x1e9   : > { %1543 = vtanh.f32 %v683_v38  ;;  %v668_v42 = vadd.f32 %v1862_v19, %v667_v40  ;;  %1365 = vmatmul.mubr.bf16.gmra.mxu0 %v730_v39  ;;  %v721_v47 = vadd.f32 0.5, %v707_v41 }
 0x1ea   : > { %v1538_v43 = vpop.eup %1537  ;;  %v1335_v44 = vpop.f32.mrf.mxu1  ;;  %1368 = vmatprep.mubr.msk.bf16.mxu0 %vm1640_vm0, %v1639_v1 }
 0x1eb   : > { %v708_v45 = vmul.f32 0.5, %v1538_v43  ;;  %v684_v46 = vmul.f32 0.5, %v668_v42 }
 0x1ed   : > { %v722_v48 = vadd.f32 0.5, %v708_v45  ;;  %1545 = vtanh.f32 %v684_v46 }
 0x1ee   : > { %v1540_v49 = vpop.eup %1539 }
 0x1ef   : > { %v731_v50 = vpack.c.bf16 %v722_v48, %v721_v47  ;;  %v709_v51 = vmul.f32 0.5, %v1540_v49 }
 0x1f1   : > { %1369 = vmatmul.mubr.bf16.gmra.mxu0 %v731_v50  ;;  %v723_v53 = vadd.f32 0.5, %v709_v51 }
 0x1f2   : > { %v1542_v52 = vpop.eup %1541  ;;  %1372 = vmatprep.mubr.msk.bf16.mxu0 %vm1640_vm0, %v1639_v1 }
 0x1f3   : > { %v710_v19 = vmul.f32 0.5, %v1542_v52 }
 0x1f5   : > { %v724_v54 = vadd.f32 0.5, %v710_v19 }
 0x1f6   : > { %v1544_v55 = vpop.eup %1543 }
 0x1f7   : > { %v732_v56 = vpack.c.bf16 %v724_v54, %v723_v53  ;;  %v711_v57 = vmul.f32 0.5, %v1544_v55 }
 0x1f9   : > { %1373 = vmatmul.mubr.bf16.gmra.mxu0 %v732_v56  ;;  %v725_v59 = vadd.f32 0.5, %v711_v57 }
 0x1fa   : > { %v1546_v58 = vpop.eup %1545  ;;  %1376 = vmatprep.mubr.msk.bf16.mxu0 %vm1640_vm0, %v1639_v1 }
 0x1fb   : > { %v712_v32 = vmul.f32 0.5, %v1546_v58 }
 0x1fd   : > { %v726_v60 = vadd.f32 0.5, %v712_v32 }
 0x1ff   : > { %v733_v61 = vpack.c.bf16 %v726_v60, %v725_v59 }
 0x201   : > { %1377 = vmatmul.mubr.bf16.gmra.mxu0 %v733_v61 }
 0x291   : > { %v839_v63 = vpop.f32.mrf.mxu0 }
 0x292   : > { %v840_v0 = vadd.f32 %v1202_v62, %v839_v63 }
 0x293   : > { %v1354_v2 = vpop.f32.mrf.mxu0 }
 0x294   : > { %895 = vst.msk [vmem:[%s1894_s30] sm:$0xff] %vm894_vm2, %v840_v0 }
 0x295   : > { %v842_v1 = vpop.f32.mrf.mxu0 }
 0x296   : > { %v843_v3 = vadd.f32 %v1202_v62, %v842_v1 }
 0x297   : > { %v1355_v4 = vpop.f32.mrf.mxu0 }
 0x298   : > { %896 = vst.msk [vmem:[%s1894_s30 + $0x8] sm:$0xff] %vm894_vm2, %v843_v3 }
 0x299   : > { %v847_v5 = vpop.f32.mrf.mxu0 }
 0x29a   : > { %v848_v6 = vadd.f32 %v1202_v62, %v847_v5 }
 0x29b   : > { %v1358_v7 = vpop.f32.mrf.mxu0 }
 0x29c   : > { %897 = vst.msk [vmem:[%s1894_s30 + $0x10] sm:$0xff] %vm894_vm2, %v848_v6 }
 0x29d   : > { %v850_v8 = vpop.f32.mrf.mxu0 }
 0x29e   : > { %v851_v9 = vadd.f32 %v1202_v62, %v850_v8 }
 0x29f   : > { %v1359_v10 = vpop.f32.mrf.mxu0 }
 0x2a0   : > { %898 = vst.msk [vmem:[%s1894_s30 + $0x18] sm:$0xff] %vm894_vm2, %v851_v9 }
 0x2a1   : > { %v855_v11 = vpop.f32.mrf.mxu0 }
 0x2a2   : > { %v856_v12 = vadd.f32 %v1202_v62, %v855_v11 }
 0x2a3   : > { %v1362_v13 = vpop.f32.mrf.mxu0 }
 0x2a4   : > { %899 = vst.msk [vmem:[%s1894_s30 + $0x20] sm:$0xff] %vm894_vm2, %v856_v12 }
 0x2a5   : > { %v858_v14 = vpop.f32.mrf.mxu0 }
 0x2a6   : > { %v859_v15 = vadd.f32 %v1202_v62, %v858_v14 }
 0x2a7   : > { %v1363_v16 = vpop.f32.mrf.mxu0 }
 0x2a8   : > { %900 = vst.msk [vmem:[%s1894_s30 + $0x28] sm:$0xff] %vm894_vm2, %v859_v15 }
 0x2a9   : > { %v863_v17 = vpop.f32.mrf.mxu0 }
 0x2aa   : > { %v864_v18 = vadd.f32 %v1202_v62, %v863_v17 }
 0x2ab   : > { %v1366_v20 = vpop.f32.mrf.mxu0 }
 0x2ac   : > { %901 = vst.msk [vmem:[%s1894_s30 + $0x30] sm:$0xff] %vm894_vm2, %v864_v18 }
 0x2ad   : > { %v866_v21 = vpop.f32.mrf.mxu0 }
 0x2ae   : > { %v867_v22 = vadd.f32 %v1202_v62, %v866_v21 }
 0x2af   : > { %v1367_v23 = vpop.f32.mrf.mxu0 }
 0x2b0   : > { %902 = vst.msk [vmem:[%s1894_s30 + $0x38] sm:$0xff] %vm894_vm2, %v867_v22 }
 0x2b1   : > { %v871_v24 = vpop.f32.mrf.mxu0 }
 0x2b2   : > { %v872_v25 = vadd.f32 %v1202_v62, %v871_v24 }
 0x2b3   : > { %v1370_v26 = vpop.f32.mrf.mxu0 }
 0x2b4   : > { %903 = vst.msk [vmem:[%s1894_s30 + $0x40] sm:$0xff] %vm894_vm2, %v872_v25 }
 0x2b5   : > { %v874_v27 = vpop.f32.mrf.mxu0 }
 0x2b6   : > { %v875_v28 = vadd.f32 %v1202_v62, %v874_v27 }
 0x2b7   : > { %v1371_v29 = vpop.f32.mrf.mxu0 }
 0x2b8   : > { %904 = vst.msk [vmem:[%s1894_s30 + $0x48] sm:$0xff] %vm894_vm2, %v875_v28 }
 0x2b9   : > { %v879_v30 = vpop.f32.mrf.mxu0 }
 0x2ba   : > { %v880_v31 = vadd.f32 %v1202_v62, %v879_v30 }
 0x2bb   : > { %v1374_v33 = vpop.f32.mrf.mxu0 }
 0x2bc   : > { %905 = vst.msk [vmem:[%s1894_s30 + $0x50] sm:$0xff] %vm894_vm2, %v880_v31 }
 0x2bd   : > { %v882_v34 = vpop.f32.mrf.mxu0 }
 0x2be   : > { %v883_v35 = vadd.f32 %v1202_v62, %v882_v34 }
 0x2bf   : > { %v1375_v36 = vpop.f32.mrf.mxu0 }
 0x2c0   : > { %906 = vst.msk [vmem:[%s1894_s30 + $0x58] sm:$0xff] %vm894_vm2, %v883_v35 }
 0x2c1   : > { %v887_v37 = vpop.f32.mrf.mxu0 }
 0x2c2   : > { %v888_v38 = vadd.f32 %v1202_v62, %v887_v37 }
 0x2c3   : > { %v1378_v39 = vpop.f32.mrf.mxu0 }
 0x2c4   : > { %907 = vst.msk [vmem:[%s1894_s30 + $0x60] sm:$0xff] %vm894_vm2, %v888_v38  ;;  %915 = sbr.rel (!%p1706_p4) target bundleno = 766 (0x2fe), region = 52 }
 0x2c5   : > { %v890_v40 = vpop.f32.mrf.mxu0 }
 0x2c6   : > { %v891_v41 = vadd.f32 %v1202_v62, %v890_v40 }
 0x2c7   : > { %v1379_v42 = vpop.f32.mrf.mxu0 }
 0x2c8   : > { %908 = vst.msk [vmem:[%s1894_s30 + $0x68] sm:$0xff] %vm894_vm2, %v891_v41 }
 0x2c9   : > { %s2031_s24 = smov (!%p918_p8, %s917_s24), 14 }
 0x2ca   : > { %s1211_s15 = sshll.u32 %s2031_s24, 7 }
 0x2cb   : > { %p1214_p9 = scmp.eq.s32.totalorder %s1211_s15, 0 }
 0x2cc   : > { %1547 = sdivrem.u32 (!%p1214_p9), %s2031_s24, 14 }
 0x2cd   : > { %926 = sbr.rel (%p1214_p9) target bundleno = 766 (0x2fe), region = 56 }
 0x2d5   : > { %s1937_s9 = spop.drf %1547 }
 0x2d6   : > { %p1215_p10 = scmp.le.s32.totalorder %s1937_s9, 0 }
 0x2d7   : > { %s2024_s27 = smov (!%p1215_p10), %s1931_s14  ;;  %s2025_s12 = smov (!%p1215_p10), %s1894_s30 }
 0x2d8   : > { %1135 = sbr.rel (%p1215_p10) target bundleno = 741 (0x2e5), region = 132  ;;  %s1946_s16 = smov (!%p1215_p10), 0  }
 0x2d9   : > { %s1948_s17 = smov (!%p1215_p10), 0  }
 0x2dd LB: >> { %v1017_v43 = vld [vmem:[%s1613_s12] sm:$0xff]  ;;  %v1019_v44 = vld [vmem:[%s1613_s12 + $0x8] sm:$0xff]  ;;  %v1021_v45 = vld [vmem:[%s1613_s12 + $0x10] sm:$0xff]  ;;  %s1045_s18 = sadd.s32 1, %s1617_s16  ;;  %s1011_s17 = sadd.s32 1, %s1621_s17   ;;  %s1621_s17 = sphi %s1948_s17, %s1011_s17   ;;  %s1617_s16 = sphi %s1946_s16, %s2026_s16   ;;  %s1613_s12 = sphi %s2025_s12, %s1050_s12   ;;  %s1609_s27 = sphi %s2024_s27, %s1051_s27  }
 0x2de   : >> { %1018 = vst [vmem:[%s1609_s27] sm:$0xff] %v1017_v43  ;;  %1020 = vst [vmem:[%s1609_s27 + $0x8] sm:$0xff] %v1019_v44  ;;  %v1023_v46 = vld [vmem:[%s1613_s12 + $0x18] sm:$0xff]  ;;  %v1025_v47 = vld [vmem:[%s1613_s12 + $0x20] sm:$0xff]  ;;  %p1046_p11 = scmp.ge.s32.totalorder %s1045_s18, %s1937_s9  ;;  %p1010_p12 = scmp.ge.s32.totalorder %s1011_s17, %s1937_s9 }
 0x2df   : >> { %1022 = vst [vmem:[%s1609_s27 + $0x10] sm:$0xff] %v1021_v45  ;;  %v1027_v48 = vld [vmem:[%s1613_s12 + $0x28] sm:$0xff]  ;;  %1024 = vst [vmem:[%s1609_s27 + $0x18] sm:$0xff] %v1023_v46  ;;  %v1029_v49 = vld [vmem:[%s1613_s12 + $0x30] sm:$0xff] }
 0x2e0   : >> { %1026 = vst [vmem:[%s1609_s27 + $0x20] sm:$0xff] %v1025_v47  ;;  %1028 = vst [vmem:[%s1609_s27 + $0x28] sm:$0xff] %v1027_v48  ;;  %v1031_v50 = vld [vmem:[%s1613_s12 + $0x38] sm:$0xff]  ;;  %v1033_v51 = vld [vmem:[%s1613_s12 + $0x40] sm:$0xff]  ;;  %s2033_s18 = smov (%p1046_p11, %s1045_s18), 0  ;;  %1013 = sbr.rel (!%p1010_p12) target bundleno = 733 (0x2dd), region = 138 }
 0x2e1   : >> { %1030 = vst [vmem:[%s1609_s27 + $0x30] sm:$0xff] %v1029_v49  ;;  %1032 = vst [vmem:[%s1609_s27 + $0x38] sm:$0xff] %v1031_v50  ;;  %v1035_v52 = vld [vmem:[%s1613_s12 + $0x48] sm:$0xff]  ;;  %v1037_v19 = vld [vmem:[%s1613_s12 + $0x50] sm:$0xff]  ;;  %s1048_s19 = smul.u32 112, %s2033_s18  ;;  %s2026_s16 = smov %s2033_s18 }
 0x2e2   : >> { %1034 = vst [vmem:[%s1609_s27 + $0x40] sm:$0xff] %v1033_v51  ;;  %v1039_v53 = vld [vmem:[%s1613_s12 + $0x58] sm:$0xff]  ;;  %1036 = vst [vmem:[%s1609_s27 + $0x48] sm:$0xff] %v1035_v52  ;;  %v1041_v54 = vld [vmem:[%s1613_s12 + $0x60] sm:$0xff] }
 0x2e3   : >> { %1038 = vst [vmem:[%s1609_s27 + $0x50] sm:$0xff] %v1037_v19  ;;  %1040 = vst [vmem:[%s1609_s27 + $0x58] sm:$0xff] %v1039_v53  ;;  %v1043_v55 = vld [vmem:[%s1613_s12 + $0x68] sm:$0xff]  ;;  %s1050_s12 = scalar_lea.vmem %s1894_s30, %s1048_s19 [#allocation2]  }
 0x2e4   : >> { %1042 = vst [vmem:[%s1609_s27 + $0x60] sm:$0xff] %v1041_v54  ;;  %1044 = vst [vmem:[%s1609_s27 + $0x68] sm:$0xff] %v1043_v55  ;;  %s1051_s27 = scalar_lea.vmem %s1931_s14, %s1048_s19  }
 0x2e5 PF: > { %1549 = sdivrem.u32 %s2031_s24, 14 }
 0x2e6   : > { %s1216_s20 = smul.u32 112, %s1937_s9 }
 0x2e8   : > { %s1056_s21 = scalar_lea.vmem %s1894_s30, %s1216_s20 [#allocation2]   ;;  %s1058_s22 = scalar_lea.vmem %s1931_s14, %s1216_s20  }
 0x2ee   : > { %s1550_s23 = spop.drf %1549 }
 0x2ef   : > { %p1218_p13 = scmp.le.s32.totalorder %s1550_s23, 0 }
 0x2f0   : > { %s1623_s26 = smov (!%p1218_p13), %s1058_s22   ;;  %s1627_s29 = smov (!%p1218_p13), %s1056_s21  }
 0x2f1   : > { %1149 = sbr.rel (%p1218_p13) target bundleno = 766 (0x2fe), region = 143  ;;  %s1631_s10 = smov (!%p1218_p13), 0  }
 0x2f2   : > { %s1635_s11 = smov (!%p1218_p13), 0  }
 0x2f6 LB: >> { %v1068_v56 = vld [vmem:[%s1629_s29] sm:$0xff]  ;;  %s1070_s13 = sadd.s32 1, %s1633_s10  ;;  %s1062_s11 = sadd.s32 1, %s1637_s11   ;;  %s1637_s11 = sphi %s1635_s11, %s1062_s11   ;;  %s1633_s10 = sphi %s1631_s10, %s1632_s10   ;;  %s1629_s29 = sphi %s1627_s29, %s1075_s29   ;;  %s1625_s26 = sphi %s1623_s26, %s1076_s26  }
 0x2f7   : >> { %1069 = vst [vmem:[%s1625_s26] sm:$0xff] %v1068_v56  ;;  %p1071_p0 = scmp.ge.s32.totalorder %s1070_s13, %s1550_s23  ;;  %p1061_p1 = scmp.ge.s32.totalorder %s1062_s11, %s1550_s23 }
 0x2f9   : >> { %s2035_s13 = smov (%p1071_p0, %s1070_s13), 0  ;;  %1064 = sbr.rel (!%p1061_p1) target bundleno = 758 (0x2f6), region = 149 }
 0x2fa   : >> { %s1219_s30 = sshll.u32 %s2035_s13, 3  ;;  %s1632_s10 = smov %s2035_s13  }
 0x2fb   : >> { %s1075_s29 = scalar_lea.vmem %s1056_s21, %s1219_s30 [#allocation2]   ;;  %s1076_s26 = scalar_lea.vmem %s1058_s22, %s1219_s30  }
 0x2fe PF: > { %p14_p2 = scmp.ge.s32.totalorder %s1696_s28, 4   ;;  %s2027_s24 = smov %s1601_s25 }
 0x2ff   : > { %s2028_s25 = smov %s1704_s8  ;;  %s2029_s26 = smov %s1696_s28 }
 0x300   :  { %16 = sbr.rel (!%p14_p2) target bundleno = 2 (0x2), region = 160 }

</bundles_post_ra>
